<compile_context>
chip_gen: v7x
topology: tpu7x:2x2x1
jax: 0.10.0
libtpu: 0.0.40
codegen_flags: <defaults>
</compile_context>

<pallas_src>
import functools

import jax
import jax.numpy as jnp
from jax import lax
from jax.experimental import pallas as pl
from jax.experimental.pallas import tpu as pltpu


def _channel_attention_kernel(x_ref, w1t_ref, w2t_ref, o_ref,
                              sum_ref, max_ref, *, hw, thw):
    """One (b, k) grid step.

    x_ref  : (TB, THW, C)  input tile (C on lanes, HW on sublanes)
    w1t_ref: (C, Cr)       first 1x1-conv weight, transposed
    w2t_ref: (Cr, C)       second 1x1-conv weight, transposed
    o_ref  : (TB, C)       sigmoid(MLP(avg) + MLP(max))
    sum_ref: (TB, C) f32   running spatial sum  (VMEM scratch)
    max_ref: (TB, C) xdt   running spatial max  (VMEM scratch)
    """
    k = pl.program_id(1)

    @pl.when(k == 0)
    def _init():
        sum_ref[...] = jnp.zeros_like(sum_ref)
        max_ref[...] = jnp.full_like(max_ref, -jnp.inf)

    x = x_ref[...]  # keep input dtype; no blanket f32 cast of the big tile
    if hw % thw != 0:
        # Last HW tile is partial: mask the padded (undefined) rows.
        rows = k * thw + lax.broadcasted_iota(jnp.int32, x.shape, 1)
        valid = rows < hw
        x_sum = jnp.where(valid, x, 0)
        x_max = jnp.where(valid, x, -jnp.inf)
    else:
        x_sum = x
        x_max = x

    # Sublane (HW-axis) reductions -> (TB, C); accumulate into scratch (VPU).
    sum_ref[...] += jnp.sum(x_sum, axis=1).astype(jnp.float32)
    max_ref[...] = jnp.maximum(max_ref[...], jnp.max(x_max, axis=1))

    @pl.when(k == pl.num_programs(1) - 1)
    def _finalize():
        avg = sum_ref[...] / jnp.float32(hw)          # (TB, C) f32
        mx = max_ref[...].astype(jnp.float32)         # (TB, C) f32
        pooled = jnp.concatenate([avg, mx], axis=0)   # (2*TB, C): one MLP pass
        w1t = w1t_ref[...].astype(jnp.float32)        # (C, Cr)
        w2t = w2t_ref[...].astype(jnp.float32)        # (Cr, C)
        h = jnp.dot(pooled, w1t, preferred_element_type=jnp.float32)
        h = jnp.maximum(h, 0.0)
        y = jnp.dot(h, w2t, preferred_element_type=jnp.float32)   # (2*TB, C)
        tb = sum_ref.shape[0]
        out = y[:tb] + y[tb:]
        o_ref[...] = jax.nn.sigmoid(out).astype(o_ref.dtype)


def channel_attention(x, w1, w2):
    """x: (B, C, H, W); w1: (C//r, C, 1, 1); w2: (C, C//r, 1, 1) -> (B, C, 1, 1)."""
    B, C, H, W = x.shape
    Cr = w1.shape[0]
    HW = H * W
    itemsize = jnp.dtype(x.dtype).itemsize

    # NHWC-flattened layout: C on the lane axis, HW on sublanes.
    x_lanes = jnp.transpose(x, (0, 2, 3, 1)).reshape(B, HW, C)
    w1t = w1.reshape(Cr, C).T          # (C, Cr)
    w2t = w2.reshape(C, Cr).T          # (Cr, C)

    # --- tile sizing -------------------------------------------------------
    TB = 8 if (B > 8 and B % 8 == 0) else B          # parallel (megacore) axis
    budget = 8 * 1024 * 1024                         # per x double-buffer half
    max_rows = max(8, budget // (TB * C * itemsize))
    THW = min(HW, 1024, max_rows)
    if THW < HW:
        THW = max(8, (THW // 8) * 8)                 # (8,128) sublane constraint
    grid = (pl.cdiv(B, TB), pl.cdiv(HW, THW))

    tile_bytes = TB * THW * C * itemsize
    vmem_limit = int(min(64 * 2**20, max(32 * 2**20, 4 * tile_bytes + (2 << 20))))

    kernel = functools.partial(_channel_attention_kernel, hw=HW, thw=THW)

    cost = pl.CostEstimate(
        flops=2 * B * C * HW + 8 * B * C * Cr,
        transcendentals=B * C,
        bytes_accessed=x_lanes.size * itemsize
        + (w1t.size + w2t.size) * jnp.dtype(w1t.dtype).itemsize
        + B * C * itemsize,
    )

    out = pl.pallas_call(
        kernel,
        out_shape=jax.ShapeDtypeStruct((B, C), x.dtype),
        grid_spec=pltpu.PrefetchScalarGridSpec(
            num_scalar_prefetch=0,
            grid=grid,
            in_specs=[
                pl.BlockSpec((TB, THW, C), lambda b, k: (b, k, 0)),
                pl.BlockSpec((C, Cr), lambda b, k: (0, 0)),
                pl.BlockSpec((Cr, C), lambda b, k: (0, 0)),
            ],
            out_specs=pl.BlockSpec((TB, C), lambda b, k: (b, 0)),
            scratch_shapes=[
                pltpu.VMEM((TB, C), jnp.float32),   # running sum
                pltpu.VMEM((TB, C), x.dtype),       # running max
            ],
        ),
        compiler_params=pltpu.CompilerParams(
            dimension_semantics=("parallel", "arbitrary"),
            vmem_limit_bytes=vmem_limit,
        ),
        cost_estimate=cost,
    )(x_lanes, w1t, w2t)

    return out.reshape(B, C, 1, 1)


def channel_attention_ref(x, w1, w2):
    """Pure-JAX reference mirroring the PyTorch module."""
    B, C, H, W = x.shape
    Cr = w1.shape[0]
    w1m = w1.reshape(Cr, C)
    w2m = w2.reshape(C, Cr)
    avg = jnp.mean(x, axis=(2, 3))           # (B, C)
    mx = jnp.max(x, axis=(2, 3))             # (B, C)

    def mlp(v):
        return jnp.maximum(v @ w1m.T, 0.0) @ w2m.T

    return jax.nn.sigmoid(mlp(avg) + mlp(mx)).reshape(B, C, 1, 1)


if __name__ == "__main__":
    ratio = 16
    key = jax.random.PRNGKey(0)
    # Two shapes: one single-tile (HW divides the tile) and one multi-tile with
    # a partial last HW tile (exercises accumulator + masking paths).
    for (B, C, H, W) in [(2, 64, 16, 16), (2, 64, 48, 48)]:
        Cr = C // ratio
        kx, k1, k2, key = jax.random.split(key, 4)
        x = jax.random.normal(kx, (B, C, H, W), dtype=jnp.float32)
        # Conv2d 1x1 weights, no bias: (out, in, 1, 1).
        w1 = jax.random.normal(k1, (Cr, C, 1, 1), dtype=jnp.float32) * 0.1
        w2 = jax.random.normal(k2, (C, Cr, 1, 1), dtype=jnp.float32) * 0.1

        out = jax.block_until_ready(channel_attention(x, w1, w2))
        ref = jax.block_until_ready(channel_attention_ref(x, w1, w2))
        assert out.shape == (B, C, 1, 1)
        assert jnp.allclose(out, ref, atol=1e-5, rtol=1e-5), (
            f"mismatch vs reference for shape {(B, C, H, W)}")

    print("KERNEL_OK")
</pallas_src>

<mosaic_0001>
module attributes {stable_mosaic.version = 11 : i64} {
  func.func @_channel_attention_kernel(%arg0: i32, %arg1: i32, %arg2: memref<2x256x64xf32, #tpu.memory_space<vmem>>, %arg3: memref<64x4xf32, #tpu.memory_space<vmem>>, %arg4: memref<4x64xf32, #tpu.memory_space<vmem>>, %arg5: memref<2x64xf32, #tpu.memory_space<vmem>>, %arg6: memref<2x64xf32, #tpu.memory_space<vmem>>, %arg7: memref<2x64xf32, #tpu.memory_space<vmem>>) attributes {dimension_semantics = [#tpu.dimension_semantics<parallel>, #tpu.dimension_semantics<arbitrary>], iteration_bounds = array<i64: 1, 1>, scalar_prefetch = 0 : i64, scratch_operands = 2 : i64, tpu.core_type = #tpu.core_type<tc>, window_params = [{transform_indices = @transform_0, window_bounds = array<i64: 2, 256, 64>}, {pipeline_mode = #tpu.pipeline_mode<synchronous>, transform_indices = @transform_1, window_bounds = array<i64: 64, 4>}, {pipeline_mode = #tpu.pipeline_mode<synchronous>, transform_indices = @transform_2, window_bounds = array<i64: 4, 64>}, {transform_indices = @transform_3, window_bounds = array<i64: 2, 64>}]} {
    %c0_i32 = arith.constant 0 : i32
    %0 = arith.cmpi eq, %arg1, %c0_i32 : i32
    %1 = arith.extui %0 : i1 to i32
    %c0_i32_0 = arith.constant 0 : i32
    %2 = arith.cmpi ne, %1, %c0_i32_0 : i32
    scf.if %2 {
      %cst_14 = arith.constant 0.000000e+00 : f32
      %15 = vector.broadcast %cst_14 : f32 to vector<2x64xf32>
      %c0_15 = arith.constant 0 : index
      %c0_16 = arith.constant 0 : index
      %16 = vector.load %arg6[%c0_15, %c0_16] : memref<2x64xf32, #tpu.memory_space<vmem>>, vector<2x64xf32>
      tpu.vector_store %arg6[%c0_15, %c0_16], %15 {strides = array<i32>} : memref<2x64xf32, #tpu.memory_space<vmem>>, vector<2x64xf32>,
      %cst_17 = arith.constant 0xFF800000 : f32
      %17 = vector.broadcast %cst_17 : f32 to vector<2x64xf32>
      %c0_18 = arith.constant 0 : index
      %c0_19 = arith.constant 0 : index
      %18 = vector.load %arg7[%c0_18, %c0_19] : memref<2x64xf32, #tpu.memory_space<vmem>>, vector<2x64xf32>
      tpu.vector_store %arg7[%c0_18, %c0_19], %17 {strides = array<i32>} : memref<2x64xf32, #tpu.memory_space<vmem>>, vector<2x64xf32>,
    } else {
    }
    %c0 = arith.constant 0 : index
    %c0_1 = arith.constant 0 : index
    %c0_2 = arith.constant 0 : index
    %3 = vector.load %arg2[%c0, %c0_1, %c0_2] : memref<2x256x64xf32, #tpu.memory_space<vmem>>, vector<2x256x64xf32>
    %c0_3 = arith.constant 0 : index
    %c0_4 = arith.constant 0 : index
    %4 = vector.load %arg6[%c0_3, %c0_4] : memref<2x64xf32, #tpu.memory_space<vmem>>, vector<2x64xf32>
    %cst = arith.constant dense<0.000000e+00> : vector<2x64xf32>
    %5 = vector.multi_reduction <add>, %3, %cst [1] : vector<2x256x64xf32> to vector<2x64xf32>
    %6 = arith.addf %4, %5 : vector<2x64xf32>
    %c0_5 = arith.constant 0 : index
    %c0_6 = arith.constant 0 : index
    %7 = vector.load %arg6[%c0_5, %c0_6] : memref<2x64xf32, #tpu.memory_space<vmem>>, vector<2x64xf32>
    tpu.vector_store %arg6[%c0_5, %c0_6], %6 {strides = array<i32>} : memref<2x64xf32, #tpu.memory_space<vmem>>, vector<2x64xf32>,
    %c0_7 = arith.constant 0 : index
    %c0_8 = arith.constant 0 : index
    %8 = vector.load %arg7[%c0_7, %c0_8] : memref<2x64xf32, #tpu.memory_space<vmem>>, vector<2x64xf32>
    %cst_9 = arith.constant dense<0xFF800000> : vector<2x64xf32>
    %9 = vector.multi_reduction <maximumf>, %3, %cst_9 [1] : vector<2x256x64xf32> to vector<2x64xf32>
    %10 = arith.maximumf %8, %9 : vector<2x64xf32>
    %c0_10 = arith.constant 0 : index
    %c0_11 = arith.constant 0 : index
    %11 = vector.load %arg7[%c0_10, %c0_11] : memref<2x64xf32, #tpu.memory_space<vmem>>, vector<2x64xf32>
    tpu.vector_store %arg7[%c0_10, %c0_11], %10 {strides = array<i32>} : memref<2x64xf32, #tpu.memory_space<vmem>>, vector<2x64xf32>,
    %c0_i32_12 = arith.constant 0 : i32
    %12 = arith.cmpi eq, %arg1, %c0_i32_12 : i32
    %13 = arith.extui %12 : i1 to i32
    %c0_i32_13 = arith.constant 0 : i32
    %14 = arith.cmpi ne, %13, %c0_i32_13 : i32
    scf.if %14 {
      %c0_14 = arith.constant 0 : index
      %c0_15 = arith.constant 0 : index
      %15 = vector.load %arg6[%c0_14, %c0_15] : memref<2x64xf32, #tpu.memory_space<vmem>>, vector<2x64xf32>
      %cst_16 = arith.constant 2.560000e+02 : f32
      %16 = vector.broadcast %cst_16 : f32 to vector<2x64xf32>
      %17 = arith.divf %15, %16 : vector<2x64xf32>
      %c0_17 = arith.constant 0 : index
      %c0_18 = arith.constant 0 : index
      %18 = vector.load %arg7[%c0_17, %c0_18] : memref<2x64xf32, #tpu.memory_space<vmem>>, vector<2x64xf32>
      %19 = tpu.concatenate %17, %18 in 0 : vector<2x64xf32>, vector<2x64xf32> -> vector<4x64xf32>
      %c0_19 = arith.constant 0 : index
      %c0_20 = arith.constant 0 : index
      %20 = vector.load %arg3[%c0_19, %c0_20] : memref<64x4xf32, #tpu.memory_space<vmem>>, vector<64x4xf32>
      %c0_21 = arith.constant 0 : index
      %c0_22 = arith.constant 0 : index
      %21 = vector.load %arg4[%c0_21, %c0_22] : memref<4x64xf32, #tpu.memory_space<vmem>>, vector<4x64xf32>
      %cst_23 = arith.constant dense<0.000000e+00> : vector<4x4xf32>
      %22 = tpu.matmul %19, %20, %cst_23 {dimension_numbers = #tpu.dot_dimension_numbers<[1], [0], [0], [1], [0, 0, 1, 1], [], []>} : vector<4x64xf32>, vector<64x4xf32>, vector<4x4xf32> -> vector<4x4xf32>
      %cst_24 = arith.constant 0.000000e+00 : f32
      %23 = vector.broadcast %cst_24 : f32 to vector<4x4xf32>
      %24 = arith.maximumf %22, %23 : vector<4x4xf32>
      %cst_25 = arith.constant dense<0.000000e+00> : vector<4x64xf32>
      %25 = tpu.matmul %24, %21, %cst_25 {dimension_numbers = #tpu.dot_dimension_numbers<[1], [0], [0], [1], [0, 0, 1, 1], [], []>} : vector<4x4xf32>, vector<4x64xf32>, vector<4x64xf32> -> vector<4x64xf32>
      %26 = vector.extract_strided_slice %25 {offsets = [0, 0], sizes = [2, 64], strides = [1, 1]} : vector<4x64xf32> to vector<2x64xf32>
      %27 = vector.extract_strided_slice %25 {offsets = [2, 0], sizes = [2, 64], strides = [1, 1]} : vector<4x64xf32> to vector<2x64xf32>
      %28 = arith.addf %26, %27 : vector<2x64xf32>
      %29 = arith.negf %28 : vector<2x64xf32>
      %30 = math.exp %29 : vector<2x64xf32>
      %cst_26 = arith.constant 1.000000e+00 : f32
      %31 = vector.broadcast %cst_26 : f32 to vector<2x64xf32>
      %32 = arith.addf %31, %30 : vector<2x64xf32>
      %33 = arith.divf %31, %32 : vector<2x64xf32>
      %c0_27 = arith.constant 0 : index
      %c0_28 = arith.constant 0 : index
      %34 = vector.load %arg5[%c0_27, %c0_28] : memref<2x64xf32, #tpu.memory_space<vmem>>, vector<2x64xf32>
      tpu.vector_store %arg5[%c0_27, %c0_28], %33 {strides = array<i32>} : memref<2x64xf32, #tpu.memory_space<vmem>>, vector<2x64xf32>,
    } else {
    }
    return
  }
  func.func @transform_0(%arg0: i32, %arg1: i32) -> (i32, i32, i32) {
    %c0_i32 = arith.constant 0 : i32
    %c0_i32_0 = arith.constant 0 : i32
    return %arg0, %arg1, %c0_i32 : i32, i32, i32
  }
  func.func @transform_1(%arg0: i32, %arg1: i32) -> (i32, i32) {
    %c0_i32 = arith.constant 0 : i32
    %c0_i32_0 = arith.constant 0 : i32
    %c0_i32_1 = arith.constant 0 : i32
    return %c0_i32, %c0_i32_0 : i32, i32
  }
  func.func @transform_2(%arg0: i32, %arg1: i32) -> (i32, i32) {
    %c0_i32 = arith.constant 0 : i32
    %c0_i32_0 = arith.constant 0 : i32
    %c0_i32_1 = arith.constant 0 : i32
    return %c0_i32, %c0_i32_0 : i32, i32
  }
  func.func @transform_3(%arg0: i32, %arg1: i32) -> (i32, i32) {
    %c0_i32 = arith.constant 0 : i32
    %c0_i32_0 = arith.constant 0 : i32
    return %arg0, %c0_i32 : i32, i32
  }
}

</mosaic_0001>

<bundles_post_ra>
// kernel: tpu_custom_call.1
= control target key start
LH: loop header
LB: loop body
LE: loop exit
PB: predicated region body
PF: predicated region fallthrough
CT: control target
= control target key end

     0   :  { %vm19_vm0 = vcmask 517120   ;;  %v661_v3 = vmov 0.0|0.0   ;;  %v662_v6 = vmov 0.0   ;;  %vm87_vm1 = vcmask 523264   ;;  %s1383_s0 = inlined_call_operand.vmem [shape: f32[2,256,64], index: 0, kind: input, shape index: {}]   ;;  %s1384_s1 = inlined_call_operand.vmem [shape: f32[64,4], index: 1, kind: input, shape index: {}]   ;;  %s1385_s2 = inlined_call_operand.vmem [shape: f32[4,64], index: 2, kind: input, shape index: {}]   ;;  %s1386_s3 = inlined_call_operand.hbm [shape: f32[2,64], index: 3, kind: output, shape index: {}]  }
   0x1   :  { %v391_v0 = vld [vmem:[%s1384_s1] sm:$0xff]  ;;  %v392_v1 = vld [vmem:[%s1384_s1 + $0x8] sm:$0xff]  ;;  %v393_v2 = vld [vmem:[%s1384_s1 + $0x10] sm:$0xff]  ;;  %616 = vmatprep.subr.bf16.mxu0 %v661_v3  ;;  %20 = vst.msk [vmem:[#allocation2] sm:$0x3] %vm19_vm0, %v662_v6  ;;  %611 = vmatprep.subr.mxu1 %v662_v6  ;;  %v663_v7 = vmov -inf  }
   0x2   :  { %v617_v4 = vpack.c.bf16 %v392_v1, %v391_v0  ;;  %v394_v5 = vld [vmem:[%s1384_s1 + $0x18] sm:$0xff]  ;;  %21 = vst.msk [vmem:[#allocation3] sm:$0x3] %vm19_vm0, %v663_v7  ;;  %v22_v8 = vld [vmem:[%s1383_s0] sm:$0xff]  ;;  %v707_v10 = vld [vmem:[%s1383_s0 + $0x8] sm:$0xff]  ;;  %vm664_vm2 = vmmov 0  }
   0x3   :  { %v620_v9 = vpack.c.bf16 %v394_v5, %v393_v2  ;;  %v712_v11 = vld [vmem:[%s1383_s0 + $0x10] sm:$0xff]  ;;  %v717_v12 = vld [vmem:[%s1383_s0 + $0x18] sm:$0xff]  ;;  %v88_v13 = vsel %vm87_vm1, %v22_v8, 0.0  ;;  %608 = vmatprep.mubr.msk.f32.mxu0 %vm664_vm2, %v662_v6  ;;  %v395_v14 = vld [vmem:[%s1384_s1 + $0x20] sm:$0xff]  ;;  %v89_v16 = vsel %vm87_vm1, %v707_v10, 0.0  ;;  %613 = vmatprep.mubr.msk.f32.mxu1 %vm664_vm2, %v662_v6  ;;  %v807_v40 = vsel %vm87_vm1, %v22_v8, -inf }
   0x4   :  { %618 = vmatpush3.bf16.msra.mxu0 %v617_v4  ;;  %v396_v15 = vld [vmem:[%s1384_s1 + $0x28] sm:$0xff]  ;;  %v91_v17 = vsel %vm87_vm1, %v712_v11, 0.0  ;;  %v397_v18 = vld [vmem:[%s1384_s1 + $0x30] sm:$0xff]  ;;  %v737_v19 = vld [vmem:[%s1383_s0 + $0x20] sm:$0xff]  ;;  %v90_v20 = vadd.f32 %v89_v16, %v88_v13  ;;  %v93_v24 = vsel %vm87_vm1, %v717_v12, 0.0 }
   0x5   :  { %619 = vmatprep.subr.bf16.mxu0 %v661_v3  ;;  %v398_v21 = vld [vmem:[%s1384_s1 + $0x38] sm:$0xff]  ;;  %v745_v22 = vld [vmem:[%s1383_s0 + $0x28] sm:$0xff]  ;;  %v750_v23 = vld [vmem:[%s1383_s0 + $0x30] sm:$0xff]  ;;  %v623_v25 = vpack.c.bf16 %v396_v15, %v395_v14  ;;  %v95_v33 = vsel %vm87_vm1, %v737_v19, 0.0 }
   0x6   :  { %v757_v26 = vld [vmem:[%s1383_s0 + $0x38] sm:$0xff]  ;;  %v762_v27 = vld [vmem:[%s1383_s0 + $0x40] sm:$0xff]  ;;  %v767_v28 = vld [vmem:[%s1383_s0 + $0x48] sm:$0xff]  ;;  %v92_v29 = vadd.f32 %v91_v17, %v90_v20  ;;  %v97_v38 = vsel %vm87_vm1, %v745_v22, 0.0  ;;  %v99_v39 = vsel %vm87_vm1, %v750_v23, 0.0  ;;  %v626_v41 = vpack.c.bf16 %v398_v21, %v397_v18 }
   0x7   :  { %v773_v30 = vld [vmem:[%s1383_s0 + $0x50] sm:$0xff]  ;;  %v778_v31 = vld [vmem:[%s1383_s0 + $0x58] sm:$0xff]  ;;  %v783_v32 = vld [vmem:[%s1383_s0 + $0x60] sm:$0xff]  ;;  %v101_v45 = vsel %vm87_vm1, %v757_v26, 0.0  ;;  %v103_v46 = vsel %vm87_vm1, %v762_v27, 0.0  ;;  %v830_v47 = vsel %vm87_vm1, %v767_v28, 0.0 }
   0x8   :  { %621 = vmatpush3.bf16.msra.mxu0 %v620_v9  ;;  %v790_v34 = vld [vmem:[%s1383_s0 + $0x68] sm:$0xff]  ;;  %v795_v35 = vld [vmem:[%s1383_s0 + $0x70] sm:$0xff]  ;;  %v800_v36 = vld [vmem:[%s1383_s0 + $0x78] sm:$0xff]  ;;  %v94_v37 = vadd.f32 %v93_v24, %v92_v29  ;;  %v844_v51 = vsel %vm87_vm1, %v773_v30, 0.0  ;;  %v848_v52 = vsel %vm87_vm1, %v778_v31, 0.0  ;;  %v852_v53 = vsel %vm87_vm1, %v783_v32, 0.0 }
   0x9   :  { %622 = vmatprep.subr.bf16.mxu0 %v661_v3  ;;  %v812_v42 = vld [vmem:[%s1383_s0 + $0x80] sm:$0xff]  ;;  %v817_v43 = vld [vmem:[%s1383_s0 + $0x88] sm:$0xff]  ;;  %v822_v44 = vld [vmem:[%s1383_s0 + $0x90] sm:$0xff]  ;;  %v872_v57 = vsel %vm87_vm1, %v790_v34, 0.0  ;;  %v876_v58 = vsel %vm87_vm1, %v795_v35, 0.0  ;;  %v880_v59 = vsel %vm87_vm1, %v800_v36, 0.0 }
   0xa   :  { %v835_v48 = vld [vmem:[%s1383_s0 + $0x98] sm:$0xff]  ;;  %v840_v49 = vld [vmem:[%s1383_s0 + $0xa0] sm:$0xff]  ;;  %v96_v50 = vadd.f32 %v95_v33, %v94_v37  ;;  %v858_v54 = vld [vmem:[%s1383_s0 + $0xa8] sm:$0xff]  ;;  %v899_v0 = vsel %vm87_vm1, %v812_v42, 0.0  ;;  %v903_v1 = vsel %vm87_vm1, %v817_v43, 0.0  ;;  %v907_v2 = vsel %vm87_vm1, %v822_v44, 0.0 }
   0xb   :  { %v863_v55 = vld [vmem:[%s1383_s0 + $0xb0] sm:$0xff]  ;;  %v868_v56 = vld [vmem:[%s1383_s0 + $0xb8] sm:$0xff]  ;;  %v885_v60 = vld [vmem:[%s1383_s0 + $0xc0] sm:$0xff]  ;;  %v926_v6 = vsel %vm87_vm1, %v835_v48, 0.0  ;;  %v949_v16 = vsel %vm87_vm1, %v840_v49, 0.0  ;;  %v965_v24 = vsel %vm87_vm1, %v858_v54, 0.0 }
   0xc   :  { %624 = vmatpush3.bf16.msra.mxu0 %v623_v25  ;;  %v890_v61 = vld [vmem:[%s1383_s0 + $0x100] sm:$0xff]  ;;  %v895_v62 = vld [vmem:[%s1383_s0 + $0x108] sm:$0xff]  ;;  %v98_v63 = vadd.f32 %v97_v38, %v96_v50  ;;  %v917_v4 = vld [vmem:[%s1383_s0 + $0x110] sm:$0xff]  ;;  %1415 = vst [vmem:[#allocation11_spill] sm:$0xff] %v926_v6  ;;  %v969_v25 = vsel %vm87_vm1, %v863_v55, 0.0  ;;  %v973_v29 = vsel %vm87_vm1, %v868_v56, 0.0 }
   0xd   :  { %625 = vmatprep.subr.bf16.mxu0 %v661_v3  ;;  %1411 = vst [vmem:[#allocation7_spill] sm:$0xff] %v890_v61  ;;  %1412 = vst [vmem:[#allocation8_spill] sm:$0xff] %v895_v62  ;;  %v912_v3 = vld [vmem:[%s1383_s0 + $0xc8] sm:$0xff]  ;;  %v922_v5 = vld [vmem:[%s1383_s0 + $0x118] sm:$0xff]  ;;  %v157_v7 = vsel %vm87_vm1, %v890_v61, 0.0  ;;  %v158_v8 = vsel %vm87_vm1, %v895_v62, 0.0 }
   0xe   :  { %1413 = vst [vmem:[#allocation9_spill] sm:$0xff] %v917_v4  ;;  %1414 = vst [vmem:[#allocation10_spill] sm:$0xff] %v922_v5  ;;  %v935_v9 = vld [vmem:[%s1383_s0 + $0xd0] sm:$0xff]  ;;  %v940_v13 = vld [vmem:[%s1383_s0 + $0xd8] sm:$0xff]  ;;  %v100_v15 = vadd.f32 %v99_v39, %v98_v63  ;;  %v159_v17 = vadd.f32 %v158_v8, %v157_v7  ;;  %v160_v18 = vsel %vm87_vm1, %v917_v4, 0.0  ;;  %v162_v33 = vsel %vm87_vm1, %v922_v5, 0.0 }
   0xf   :  { %v945_v14 = vld [vmem:[%s1383_s0 + $0x120] sm:$0xff]  ;;  %1417 = vst [vmem:[#allocation13_spill] sm:$0xff] %v949_v16  ;;  %v961_v21 = vld [vmem:[%s1383_s0 + $0xe8] sm:$0xff]  ;;  %1420 = vst [vmem:[#allocation16_spill] sm:$0xff] %v965_v24  ;;  %v994_v50 = vsel %vm87_vm1, %v885_v60, 0.0  ;;  %v998_v63 = vsel %vm87_vm1, %v912_v3, 0.0 }
  0x10   :  { %627 = vmatpush3.bf16.msra.mxu0 %v626_v41  ;;  %1416 = vst [vmem:[#allocation12_spill] sm:$0xff] %v945_v14  ;;  %v956_v20 = vld [vmem:[%s1383_s0 + $0xe0] sm:$0xff]  ;;  %1419 = vst [vmem:[#allocation15_spill] sm:$0xff] %v961_v21  ;;  %v980_v37 = vld [vmem:[%s1383_s0 + $0x128] sm:$0xff]  ;;  %v102_v41 = vadd.f32 %v101_v45, %v100_v15  ;;  %v161_v7 = vadd.f32 %v160_v18, %v159_v17  ;;  %v1017_v15 = vsel %vm87_vm1, %v935_v9, 0.0  ;;  %v1021_v17 = vsel %vm87_vm1, %v940_v13, 0.0 }
  0x11   :  { %1418 = vst [vmem:[#allocation14_spill] sm:$0xff] %v956_v20  ;;  %1421 = vst [vmem:[#allocation17_spill] sm:$0xff] %v969_v25  ;;  %v985_v38 = vld [vmem:[%s1383_s0 + $0x130] sm:$0xff]  ;;  %v990_v39 = vld [vmem:[%s1383_s0 + $0x138] sm:$0xff]  ;;  %v164_v18 = vsel %vm87_vm1, %v945_v14, 0.0  ;;  %v1046_v24 = vsel %vm87_vm1, %v961_v21, 0.0 }
  0x12   :  { %1422 = vst [vmem:[#allocation18_spill] sm:$0xff] %v973_v29  ;;  %1423 = vst [vmem:[#allocation19_spill] sm:$0xff] %v980_v37  ;;  %v1003_v8 = vld [vmem:[%s1383_s0 + $0x140] sm:$0xff]  ;;  %v1008_v29 = vld [vmem:[%s1383_s0 + $0x148] sm:$0xff]  ;;  %v104_v25 = vadd.f32 %v103_v46, %v102_v41  ;;  %v163_v14 = vadd.f32 %v162_v33, %v161_v7  ;;  %v166_v41 = vsel %vm87_vm1, %v980_v37, 0.0  ;;  %v168_v33 = vsel %vm87_vm1, %v985_v38, 0.0 }
  0x13   :  { %1424 = vst [vmem:[#allocation20_spill] sm:$0xff] %v985_v38  ;;  %1425 = vst [vmem:[#allocation21_spill] sm:$0xff] %v990_v39  ;;  %v1013_v45 = vld [vmem:[%s1383_s0 + $0x150] sm:$0xff]  ;;  %v1056_v16 = vld [vmem:[%s1383_s0 + $0x178] sm:$0xff]  ;;  %v170_v7 = vsel %vm87_vm1, %v990_v39, 0.0  ;;  %v172_v39 = vsel %vm87_vm1, %v1003_v8, 0.0 }
  0x14   :  { %1426 = vst [vmem:[#allocation22_spill] sm:$0xff] %v994_v50  ;;  %1427 = vst [vmem:[#allocation23_spill] sm:$0xff] %v998_v63  ;;  %v1028_v63 = vld [vmem:[%s1383_s0 + $0x158] sm:$0xff]  ;;  %v1033_v50 = vld [vmem:[%s1383_s0 + $0x160] sm:$0xff]  ;;  %v106_v38 = vadd.f32 %v830_v47, %v104_v25  ;;  %v165_v4 = vadd.f32 %v164_v18, %v163_v14  ;;  %v174_v62 = vsel %vm87_vm1, %v1008_v29, 0.0  ;;  %v176_v47 = vsel %vm87_vm1, %v1013_v45, 0.0 }
  0x15   :  { %1428 = vst [vmem:[#allocation24_spill] sm:$0xff] %v1003_v8  ;;  %1429 = vst [vmem:[#allocation25_spill] sm:$0xff] %v1008_v29  ;;  %v1051_v5 = vld [vmem:[%s1383_s0 + $0x170] sm:$0xff]  ;;  %v1061_v46 = vld [vmem:[%s1383_s0 + $0x180] sm:$0xff]  ;;  %v178_v14 = vsel %vm87_vm1, %v1028_v63, 0.0  ;;  %v1105_v25 = vsel %vm87_vm1, %v1033_v50, 0.0 }
  0x16   :  { %1430 = vst [vmem:[#allocation26_spill] sm:$0xff] %v1013_v45  ;;  %1431 = vst [vmem:[#allocation27_spill] sm:$0xff] %v1017_v15  ;;  %v1038_v15 = vld [vmem:[%s1383_s0 + $0x168] sm:$0xff]  ;;  %v1082_v37 = vld [vmem:[%s1383_s0 + $0x198] sm:$0xff]  ;;  %v167_v8 = vadd.f32 %v166_v41, %v165_v4  ;;  %v1132_v21 = vsel %vm87_vm1, %v1061_v46, 0.0 }
  0x17   :  { %1432 = vst [vmem:[#allocation28_spill] sm:$0xff] %v1021_v17  ;;  %1433 = vst [vmem:[#allocation29_spill] sm:$0xff] %v1028_v63  ;;  %v1042_v17 = vsel %vm87_vm1, %v956_v20, 0.0  ;;  %v1092_v61 = vld [vmem:[%s1383_s0 + $0x1a0] sm:$0xff]  ;;  %v1097_v6 = vld [vmem:[%s1383_s0 + $0x1a8] sm:$0xff]  ;;  %v1109_v18 = vsel %vm87_vm1, %v1038_v15, 0.0  ;;  %v108_v63 = vadd.f32 %v844_v51, %v106_v38 }
  0x18   :  { %1434 = vst [vmem:[#allocation30_spill] sm:$0xff] %v1033_v50  ;;  %1435 = vst [vmem:[#allocation31_spill] sm:$0xff] %v1038_v15  ;;  %v1114_v29 = vld [vmem:[%s1383_s0 + $0x1b0] sm:$0xff]  ;;  %v1119_v45 = vld [vmem:[%s1383_s0 + $0x1b8] sm:$0xff]  ;;  %v1124_v50 = vsel %vm87_vm1, %v1051_v5, 0.0  ;;  %v1128_v15 = vsel %vm87_vm1, %v1056_v16, 0.0  ;;  %v169_v41 = vadd.f32 %v168_v33, %v167_v8 }
  0x19   :  { %1436 = vst [vmem:[#allocation32_spill] sm:$0xff] %v1042_v17  ;;  %1437 = vst [vmem:[#allocation33_spill] sm:$0xff] %v1046_v24  ;;  %v1072_v24 = vld [vmem:[%s1383_s0 + $0x188] sm:$0xff]  ;;  %v1077_v17 = vld [vmem:[%s1383_s0 + $0x190] sm:$0xff]  ;;  %v1144_v4 = vsel %vm87_vm1, %v1082_v37, 0.0  ;;  %v110_v38 = vadd.f32 %v848_v52, %v108_v63 }
  0x1a   :  { %1438 = vst [vmem:[#allocation34_spill] sm:$0xff] %v1056_v16  ;;  %1439 = vst [vmem:[#allocation35_spill] sm:$0xff] %v1061_v46  ;;  %v1136_v20 = vsel %vm87_vm1, %v1072_v24, 0.0  ;;  %v1140_v51 = vsel %vm87_vm1, %v1077_v17, 0.0  ;;  %v1149_v16 = vsel %vm87_vm1, %v1092_v61, 0.0  ;;  %v1153_v46 = vsel %vm87_vm1, %v1097_v6, 0.0 }
  0x1b   :  { %1440 = vst [vmem:[#allocation36_spill] sm:$0xff] %v1077_v17  ;;  %1441 = vst [vmem:[#allocation37_spill] sm:$0xff] %v1082_v37 }
  0x1c   :  { %1442 = vst [vmem:[#allocation38_spill] sm:$0xff] %v1092_v61  ;;  %1443 = vst [vmem:[#allocation39_spill] sm:$0xff] %v1097_v6 }
  0x1d   :  { %1444 = vst [vmem:[#allocation40_spill] sm:$0xff] %v1114_v29  ;;  %1445 = vst [vmem:[#allocation41_spill] sm:$0xff] %v1119_v45 }
  0x1e   :  { %8 = vsyncpa [#allocation5], 0  ;;  %v1157_v17 = vsel %vm87_vm1, %v1114_v29, 0.0  ;;  %v1161_v37 = vsel %vm87_vm1, %v1119_v45, 0.0  ;;  %v236_v52 = vsel %vm87_vm1, %v707_v10, -inf  ;;  %v237_v63 = vsel %vm87_vm1, %v712_v11, -inf }
  0x1f   :  { %1446 = vst [vmem:[#allocation42_spill] sm:$0xff] %v1157_v17  ;;  %1447 = vst [vmem:[#allocation43_spill] sm:$0xff] %v1161_v37  ;;  %v112_v8 = vadd.f32 %v852_v53, %v110_v38  ;;  %v171_v33 = vadd.f32 %v170_v7, %v169_v41  ;;  %v238_v6 = vmax.f32 %v807_v40, %v237_v63  ;;  %v239_v61 = vsel %vm87_vm1, %v717_v12, -inf  ;;  %s665_s17 = smov [#allocation4]  }
  0x20   :  { %v240_v29 = vmax.f32 %v236_v52, %v239_v61  ;;  %v241_v17 = vsel %vm87_vm1, %v737_v19, -inf  ;;  %v243_v45 = vsel %vm87_vm1, %v745_v22, -inf  ;;  %v245_v10 = vsel %vm87_vm1, %v750_v23, -inf  ;;  %s569_s18 = sshll.u32 %s665_s17, 4  ;;  %s570_s18 = int_to_ptr.vmem [resolvable:$true] %s569_s18 }
  0x21   :  { %v114_v11 = vadd.f32 %v872_v57, %v112_v8  ;;  %v173_v37 = vadd.f32 %v172_v39, %v171_v33  ;;  %v242_v53 = vmax.f32 %v238_v6, %v241_v17  ;;  %v247_v40 = vsel %vm87_vm1, %v757_v26, -inf  ;;  %v1448_v33 = vld [vmem:[#allocation14_spill] sm:$0xff]  ;;  %p642_p1 = scmp.lt.s32.totalorder %s570_s18, %s570_s18 }
  0x22   :  { %v244_v7 = vmax.f32 %v240_v29, %v243_v45  ;;  %v249_v12 = vsel %vm87_vm1, %v762_v27, -inf  ;;  %v251_v19 = vsel %vm87_vm1, %v767_v28, -inf  ;;  %v253_v22 = vsel %vm87_vm1, %v773_v30, -inf }
  0x23   :  { %v116_v61 = vadd.f32 %v876_v58, %v114_v11  ;;  %v175_v23 = vadd.f32 %v174_v62, %v173_v37  ;;  %v246_v38 = vmax.f32 %v242_v53, %v245_v10  ;;  %v255_v57 = vsel %vm87_vm1, %v778_v31, -inf  ;;  %v1449_v11 = vld [vmem:[#allocation15_spill] sm:$0xff] }
  0x24   :  { %v248_v6 = vmax.f32 %v244_v7, %v247_v40  ;;  %v257_v26 = vsel %vm87_vm1, %v783_v32, -inf  ;;  %v259_v27 = vsel %vm87_vm1, %v790_v34, -inf  ;;  %v261_v28 = vsel %vm87_vm1, %v795_v35, -inf  ;;  %v1451_v7 = vld [vmem:[#allocation7_spill] sm:$0xff] }
  0x25   :  { %v118_v29 = vadd.f32 %v880_v59, %v116_v61  ;;  %v177_v30 = vadd.f32 %v176_v47, %v175_v23  ;;  %v250_v39 = vmax.f32 %v246_v38, %v249_v12  ;;  %v263_v58 = vsel %vm87_vm1, %v800_v36, -inf  ;;  %v1453_v61 = vld [vmem:[#allocation9_spill] sm:$0xff] }
  0x26   :  { %v252_v62 = vmax.f32 %v248_v6, %v251_v19  ;;  %v265_v31 = vsel %vm87_vm1, %v812_v42, -inf  ;;  %v267_v32 = vsel %vm87_vm1, %v817_v43, -inf  ;;  %v269_v34 = vsel %vm87_vm1, %v822_v44, -inf  ;;  %v1216_v44 = vld [vmem:[%s1383_s0 + $0xf0] sm:$0xff] }
  0x27   :  { %v120_v37 = vadd.f32 %v899_v0, %v118_v29  ;;  %v179_v35 = vadd.f32 %v178_v14, %v177_v30  ;;  %v254_v45 = vmax.f32 %v250_v39, %v253_v22  ;;  %v271_v59 = vsel %vm87_vm1, %v835_v48, -inf  ;;  %v1452_v19 = vld [vmem:[#allocation8_spill] sm:$0xff]  ;;  %v1454_v38 = vld [vmem:[#allocation13_spill] sm:$0xff] }
  0x28   :  { %v256_v17 = vmax.f32 %v252_v62, %v255_v57  ;;  %v273_v36 = vsel %vm87_vm1, %v840_v49, -inf  ;;  %v275_v42 = vsel %vm87_vm1, %v858_v54, -inf  ;;  %v277_v43 = vsel %vm87_vm1, %v863_v55, -inf  ;;  %v1225_v49 = vld [vmem:[%s1383_s0 + $0xf8] sm:$0xff]  ;;  %v1456_v30 = vld [vmem:[#allocation12_spill] sm:$0xff] }
  0x29   :  { %v122_v0 = vadd.f32 %v903_v1, %v120_v37  ;;  %v181_v47 = vadd.f32 %v1105_v25, %v179_v35  ;;  %v258_v48 = vmax.f32 %v254_v45, %v257_v26  ;;  %v279_v14 = vsel %vm87_vm1, %v868_v56, -inf }
  0x2a   :  { %v260_v54 = vmax.f32 %v256_v17, %v259_v27  ;;  %v281_v55 = vsel %vm87_vm1, %v885_v60, -inf  ;;  %v283_v41 = vsel %vm87_vm1, %v912_v3, -inf  ;;  %v285_v1 = vsel %vm87_vm1, %v935_v9, -inf  ;;  %v1450_v9 = vld [vmem:[#allocation11_spill] sm:$0xff] }
  0x2b   :  { %v124_v25 = vadd.f32 %v907_v2, %v122_v0  ;;  %v183_v52 = vadd.f32 %v1109_v18, %v181_v47  ;;  %v262_v56 = vmax.f32 %v258_v48, %v261_v28  ;;  %v287_v63 = vsel %vm87_vm1, %v940_v13, -inf  ;;  %v1455_v28 = vld [vmem:[#allocation10_spill] sm:$0xff]  ;;  %v1460_v0 = vld [vmem:[#allocation21_spill] sm:$0xff] }
  0x2c   :  { %v264_v8 = vmax.f32 %v260_v54, %v263_v58  ;;  %v289_v10 = vsel %vm87_vm1, %v1448_v33, -inf  ;;  %v291_v60 = vsel %vm87_vm1, %v1449_v11, -inf  ;;  %v1243_v3 = vsel %vm87_vm1, %v1216_v44, -inf  ;;  %v1457_v58 = vld [vmem:[#allocation19_spill] sm:$0xff]  ;;  %v1461_v48 = vld [vmem:[#allocation17_spill] sm:$0xff]  ;;  %v1462_v11 = vld [vmem:[#allocation24_spill] sm:$0xff] }
  0x2d   :  { %v126_v53 = vadd.f32 %v1450_v9, %v124_v25  ;;  %v185_v2 = vadd.f32 %v1124_v50, %v183_v52  ;;  %v266_v18 = vmax.f32 %v262_v56, %v265_v31  ;;  %v1249_v40 = vsel %vm87_vm1, %v1225_v49, -inf  ;;  %v1458_v31 = vld [vmem:[#allocation16_spill] sm:$0xff]  ;;  %v1464_v9 = vld [vmem:[#allocation18_spill] sm:$0xff] }
  0x2e   :  { %v268_v13 = vmax.f32 %v264_v8, %v267_v32  ;;  %v304_v12 = vsel %vm87_vm1, %v1451_v7, -inf  ;;  %v305_v22 = vsel %vm87_vm1, %v1452_v19, -inf  ;;  %v306_v23 = vsel %vm87_vm1, %v1453_v61, -inf  ;;  %v1465_v19 = vld [vmem:[#allocation26_spill] sm:$0xff] }
  0x2f   :  { %v128_v57 = vadd.f32 %v1454_v38, %v126_v53  ;;  %v187_v6 = vadd.f32 %v1128_v15, %v185_v2  ;;  %v270_v50 = vmax.f32 %v266_v18, %v269_v34  ;;  %v307_v26 = vmax.f32 %v304_v12, %v306_v23  ;;  %v1459_v34 = vld [vmem:[#allocation20_spill] sm:$0xff] }
  0x30   :  { %v272_v27 = vmax.f32 %v268_v13, %v271_v59  ;;  %v308_v29 = vsel %vm87_vm1, %v1455_v28, -inf  ;;  %v310_v39 = vsel %vm87_vm1, %v1456_v30, -inf  ;;  %v312_v62 = vsel %vm87_vm1, %v1457_v58, -inf }
  0x31   :  { %v130_v32 = vadd.f32 %v1458_v31, %v128_v57  ;;  %v189_v37 = vadd.f32 %v1132_v21, %v187_v6  ;;  %v274_v35 = vmax.f32 %v270_v50, %v273_v36  ;;  %v309_v45 = vmax.f32 %v305_v22, %v308_v29  ;;  %v1463_v36 = vld [vmem:[#allocation25_spill] sm:$0xff]  ;;  %v1467_v22 = vld [vmem:[#allocation22_spill] sm:$0xff] }
  0x32   :  { %v276_v17 = vmax.f32 %v272_v27, %v275_v42  ;;  %v311_v15 = vmax.f32 %v307_v26, %v310_v39  ;;  %v314_v59 = vsel %vm87_vm1, %v1459_v34, -inf  ;;  %v316_v47 = vsel %vm87_vm1, %v1460_v0, -inf  ;;  %v1468_v26 = vld [vmem:[#allocation30_spill] sm:$0xff]  ;;  %v1470_v27 = vld [vmem:[#allocation23_spill] sm:$0xff] }
  0x33   :  { %v132_v54 = vadd.f32 %v1461_v48, %v130_v32  ;;  %v191_v25 = vadd.f32 %v1136_v20, %v189_v37  ;;  %v278_v52 = vmax.f32 %v274_v35, %v277_v43  ;;  %v313_v56 = vmax.f32 %v309_v45, %v312_v62  ;;  %v1466_v43 = vld [vmem:[#allocation29_spill] sm:$0xff]  ;;  %v78_v31 = vld [vmem:[%s1383_s0 + $0x1c0] sm:$0xff]  ;;  %v79_v34 = vld [vmem:[%s1383_s0 + $0x1c8] sm:$0xff] }
  0x34   :  { %v280_v8 = vmax.f32 %v276_v17, %v279_v14  ;;  %v315_v33 = vmax.f32 %v311_v15, %v314_v59  ;;  %v318_v21 = vsel %vm87_vm1, %v1462_v11, -inf  ;;  %v320_v42 = vsel %vm87_vm1, %v1463_v36, -inf  ;;  %v1472_v32 = vld [vmem:[#allocation27_spill] sm:$0xff]  ;;  %v1474_v59 = vld [vmem:[#allocation28_spill] sm:$0xff] }
  0x35   :  { %v134_v53 = vadd.f32 %v1464_v9, %v132_v54  ;;  %v193_v2 = vadd.f32 %v1140_v51, %v191_v25  ;;  %v282_v18 = vmax.f32 %v278_v52, %v281_v55  ;;  %v317_v13 = vmax.f32 %v313_v56, %v316_v47  ;;  %v1469_v55 = vld [vmem:[#allocation31_spill] sm:$0xff]  ;;  %v1475_v47 = vld [vmem:[#allocation42_spill] sm:$0xff]  ;;  %v1477_v56 = vld [vmem:[#allocation37_spill] sm:$0xff] }
  0x36   :  { %v284_v7 = vmax.f32 %v280_v8, %v283_v41  ;;  %v319_v12 = vmax.f32 %v315_v33, %v318_v21  ;;  %v322_v20 = vsel %vm87_vm1, %v1465_v19, -inf  ;;  %v324_v14 = vsel %vm87_vm1, %v1466_v43, -inf  ;;  %v1473_v17 = vld [vmem:[#allocation35_spill] sm:$0xff]  ;;  %v80_v8 = vld [vmem:[%s1383_s0 + $0x1d0] sm:$0xff]  ;;  %v1480_v9 = vld [vmem:[#allocation38_spill] sm:$0xff] }
  0x37   :  { %v136_v61 = vadd.f32 %v1467_v22, %v134_v53  ;;  %v195_v23 = vadd.f32 %v1144_v4, %v193_v2  ;;  %v286_v38 = vmax.f32 %v282_v18, %v285_v1  ;;  %v321_v57 = vmax.f32 %v317_v13, %v320_v42  ;;  %v1471_v1 = vld [vmem:[#allocation34_spill] sm:$0xff]  ;;  %v1478_v33 = vld [vmem:[#allocation32_spill] sm:$0xff]  ;;  %v1479_v21 = vld [vmem:[#allocation43_spill] sm:$0xff] }
  0x38   :  { %v288_v6 = vmax.f32 %v284_v7, %v287_v63  ;;  %v323_v50 = vmax.f32 %v319_v12, %v322_v20  ;;  %v326_v51 = vsel %vm87_vm1, %v1468_v26, -inf  ;;  %v328_v41 = vsel %vm87_vm1, %v1469_v55, -inf  ;;  %v1481_v13 = vld [vmem:[#allocation39_spill] sm:$0xff]  ;;  %v81_v12 = vld [vmem:[%s1383_s0 + $0x1d8] sm:$0xff]  ;;  %v1483_v22 = vld [vmem:[#allocation40_spill] sm:$0xff] }
  0x39   :  { %v138_v28 = vadd.f32 %v1470_v27, %v136_v61  ;;  %v197_v29 = vadd.f32 %v1149_v16, %v195_v23  ;;  %v290_v30 = vmax.f32 %v286_v38, %v289_v10  ;;  %v325_v39 = vmax.f32 %v321_v57, %v324_v14  ;;  %v1482_v19 = vld [vmem:[#allocation33_spill] sm:$0xff]  ;;  %v82_v26 = vld [vmem:[%s1383_s0 + $0x1e0] sm:$0xff] }
  0x3a   :  { %v292_v58 = vmax.f32 %v288_v6, %v291_v60  ;;  %v327_v62 = vmax.f32 %v323_v50, %v326_v51  ;;  %v330_v4 = vsel %vm87_vm1, %v1051_v5, -inf  ;;  %v332_v63 = vsel %vm87_vm1, %v1471_v1, -inf  ;;  %v1484_v6 = vld [vmem:[#allocation41_spill] sm:$0xff] }
  0x3b   :  { %v140_v37 = vadd.f32 %v1472_v32, %v138_v28  ;;  %v199_v35 = vadd.f32 %v1153_v46, %v197_v29  ;;  %v294_v16 = vmax.f32 %v290_v30, %v1243_v3  ;;  %v329_v10 = vmax.f32 %v325_v39, %v328_v41  ;;  %v1476_v3 = vld [vmem:[#allocation36_spill] sm:$0xff] }
  0x3c   :  { %v296_v60 = vmax.f32 %v292_v58, %v1249_v40  ;;  %v331_v45 = vmax.f32 %v327_v62, %v330_v4  ;;  %v334_v5 = vsel %vm87_vm1, %v1473_v17, -inf  ;;  %v336_v15 = vsel %vm87_vm1, %v1072_v24, -inf  ;;  %v83_v39 = vld [vmem:[%s1383_s0 + $0x1e8] sm:$0xff] }
  0x3d   :  { %v142_v0 = vadd.f32 %v1474_v59, %v140_v37  ;;  %v201_v46 = vadd.f32 %v1475_v47, %v199_v35  ;;  %v333_v48 = vmax.f32 %v329_v10, %v332_v63  ;;  %v338_v54 = vsel %vm87_vm1, %v1476_v3, -inf  ;;  %v84_v63 = vld [vmem:[%s1383_s0 + $0x1f0] sm:$0xff]  ;;  %v85_v35 = vld [vmem:[%s1383_s0 + $0x1f8] sm:$0xff] }
  0x3e   :  { %v147_v40 = vsel %vm87_vm1, %v1216_v44, 0.0  ;;  %v204_v25 = vsel %vm87_vm1, %v78_v31, 0.0  ;;  %v335_v52 = vmax.f32 %v331_v45, %v334_v5  ;;  %v340_v24 = vsel %vm87_vm1, %v1477_v56, -inf }
  0x3f   :  { %v144_v11 = vadd.f32 %v1478_v33, %v142_v0  ;;  %v203_v36 = vadd.f32 %v1479_v21, %v201_v46  ;;  %v337_v42 = vmax.f32 %v333_v48, %v336_v15  ;;  %v342_v53 = vsel %vm87_vm1, %v1480_v9, -inf }
  0x40   :  { %v206_v44 = vsel %vm87_vm1, %v79_v34, 0.0  ;;  %v297_v2 = vmax.f32 %v294_v16, %v296_v60  ;;  %v339_v18 = vmax.f32 %v335_v52, %v338_v54  ;;  %v344_v7 = vsel %vm87_vm1, %v1481_v13, -inf }
  0x41   :  { %v146_v20 = vadd.f32 %v1482_v19, %v144_v11  ;;  %v205_v43 = vadd.f32 %v204_v25, %v203_v36  ;;  %v341_v14 = vmax.f32 %v337_v42, %v340_v24  ;;  %v346_v61 = vsel %vm87_vm1, %v1483_v22, -inf }
  0x42   :  { %v149_v23 = vsel %vm87_vm1, %v1225_v49, 0.0  ;;  %v208_v38 = vsel %vm87_vm1, %v80_v8, 0.0  ;;  %v343_v57 = vmax.f32 %v339_v18, %v342_v53  ;;  %v348_v50 = vsel %vm87_vm1, %v1484_v6, -inf  ;;  %v234_v6 = vld [vmem:[#allocation3] sm:$0x3] }
  0x43   :  { %v148_v51 = vadd.f32 %v147_v40, %v146_v20  ;;  %v207_v55 = vadd.f32 %v206_v44, %v205_v43  ;;  %v345_v41 = vmax.f32 %v341_v14, %v344_v7  ;;  %v350_v27 = vsel %vm87_vm1, %v78_v31, -inf }
  0x44   :  { %v210_v28 = vsel %vm87_vm1, %v81_v12, 0.0  ;;  %v298_v29 = vrot.slane %v297_v2, 4  ;;  %v347_v30 = vmax.f32 %v343_v57, %v346_v61  ;;  %v352_v49 = vsel %vm87_vm1, %v79_v34, -inf }
  0x45   :  { %v150_v58 = vadd.f32 %v149_v23, %v148_v51  ;;  %v209_v62 = vadd.f32 %v208_v38, %v207_v55  ;;  %v349_v4 = vmax.f32 %v345_v41, %v348_v50  ;;  %v354_v1 = vsel %vm87_vm1, %v80_v8, -inf  ;;  %v86_v38 = vld [vmem:[#allocation2] sm:$0x3] }
  0x46   :  { %v212_v31 = vsel %vm87_vm1, %v82_v26, 0.0  ;;  %v351_v32 = vmax.f32 %v347_v30, %v350_v27  ;;  %v356_v37 = vsel %vm87_vm1, %v81_v12, -inf  ;;  %v358_v45 = vsel %vm87_vm1, %v82_v26, -inf }
  0x47   :  { %v151_v16 = vrot.slane %v150_v58, 4  ;;  %v211_v10 = vadd.f32 %v210_v28, %v209_v62  ;;  %v353_v60 = vmax.f32 %v349_v4, %v352_v49  ;;  %v214_v17 = vsel %vm87_vm1, %v83_v39, 0.0 }
  0x48   :  { %v299_v5 = vmax.f32 %v297_v2, %v298_v29  ;;  %v355_v15 = vmax.f32 %v351_v32, %v354_v1  ;;  %v360_v34 = vsel %vm87_vm1, %v83_v39, -inf  ;;  %v362_v46 = vsel %vm87_vm1, %v84_v63, -inf  ;;  %v399_v39 = vld [vmem:[%s1385_s2] sm:$0xf]  ;;  %s637_s2 = scalar_lea.vmem %s570_s18, 32 }
  0x49   :  { %v152_v59 = vadd.f32 %v151_v16, %v150_v58  ;;  %v213_v0 = vadd.f32 %v212_v31, %v211_v10  ;;  %v357_v47 = vmax.f32 %v353_v60, %v356_v37  ;;  %v216_v48 = vsel %vm87_vm1, %v84_v63, 0.0  ;;  %p638_p0 = scmp.ne.s32.totalorder %s570_s18, %s637_s2  ;;  %p643_p2 = scmp.lt.s32.totalorder %s637_s2, %s637_s2 }
  0x4a   :  { %v359_v3 = vmax.f32 %v355_v15, %v358_v45  ;;  %v364_v54 = vsel %vm87_vm1, %v85_v35, -inf  ;;  %v218_v52 = vsel %vm87_vm1, %v85_v35, 0.0  ;;  %v300_v33 = vrot.slane %v299_v5, 2 }
  0x4b   :  { %v215_v40 = vadd.f32 %v214_v17, %v213_v0  ;;  %v361_v25 = vmax.f32 %v357_v47, %v360_v34  ;;  %v153_v24 = vrot.slane %v152_v59, 2  ;;  %vm228_vm3 = vcmask 1041409   ;;  %p644_p3 = por %p643_p2, %p642_p1 }
  0x4c   :  { %v363_v56 = vmax.f32 %v359_v3, %v362_v46  ;;  %v301_v53 = vmax.f32 %v299_v5, %v300_v33  ;;  %vm389_vm4 = vcmask 1041408   ;;  %vm478_vm5 = vcmask 1043456  }
  0x4d   :  { %v217_v8 = vadd.f32 %v216_v48, %v215_v40  ;;  %v365_v11 = vmax.f32 %v361_v25, %v364_v54  ;;  %v154_v42 = vadd.f32 %v153_v24, %v152_v59  ;;  %612 = vmatpush3.msk.msra.mxu1 %vm478_vm5, %v399_v39  ;;  %vm474_vm6 = vcmask 31744   ;;  %p645_p4 = pnand %p644_p3, %p638_p0 }
  0x4e   :  { %v302_v12 = vrot.slane %v301_v53, 1 }
  0x4f   :  { %v219_v21 = vadd.f32 %v218_v52, %v217_v8  ;;  %v366_v36 = vmax.f32 %v363_v56, %v365_v11  ;;  %v155_v13 = vrot.slane %v154_v42, 1 }
  0x50   :  { %v303_v61 = vmax.f32 %v301_v53, %v302_v12 }
  0x51   :  { %v220_v9 = vrot.slane %v219_v21, 4  ;;  %v367_v44 = vrot.slane %v366_v36, 4  ;;  %v156_v14 = vadd.f32 %v155_v13, %v154_v42 }
  0x53   :  { %v221_v2 = vadd.f32 %v220_v9, %v219_v21  ;;  %v368_v18 = vmax.f32 %v366_v36, %v367_v44 }
  0x55   :  { %v222_v7 = vrot.slane %v221_v2, 2  ;;  %v369_v19 = vrot.slane %v368_v18, 2 }
  0x57   :  { %v223_v20 = vadd.f32 %v222_v7, %v221_v2  ;;  %v370_v43 = vmax.f32 %v368_v18, %v369_v19 }
  0x59   :  { %v224_v22 = vrot.slane %v223_v20, 1  ;;  %v371_v23 = vrot.slane %v370_v43, 1 }
  0x5b   :  { %v225_v57 = vadd.f32 %v224_v22, %v223_v20  ;;  %v372_v50 = vmax.f32 %v370_v43, %v371_v23 }
  0x5d   :  { %v229_v26 = vsel %vm228_vm3, %v225_v57, %v156_v14  ;;  %v375_v51 = vsel %vm228_vm3, %v372_v50, %v303_v61 }
  0x5e   :  { %v231_v55 = vadd.f32 %v229_v26, %v86_v38  ;;  %v377_v41 = vmax.f32 %v234_v6, %v375_v51 }
  0x60   :  { %233 = vst.msk [vmem:[#allocation2] sm:$0x3] %vm19_vm0, %v231_v55  ;;  %378 = vst.msk [vmem:[#allocation3] sm:$0x3] %vm19_vm0, %v377_v41 }
  0x67   :  { %v382_v27 = vld [vmem:[#allocation2] sm:$0x3]  ;;  %v385_v28 = vld [vmem:[#allocation3] sm:$0x3] }
  0x68   :  { %v384_v29 = vmul.f32 0.00390625, %v382_v27  ;;  %v387_v30 = vrot.slane %v385_v28, 6 }
  0x6a   :  { %v390_v49 = vsel %vm389_vm4, %v384_v29, %v387_v30 }
  0x6b   :  { %609 = vmatmul.mubr.msk.f32.vlgmr.msra.gmra.mrb[0].mxu0 %vm87_vm1, %v390_v49 }
 0x13e   :  { %v469_v58 = vpop.f32.mrb[0].mxu0 }
 0x13f   :  { %v473_v62 = vmax.f32 %v469_v58, 0.0  ;;  %v610_v4 = vpop.f32.mrb[1].mxu0 }
 0x141   :  { %614 = vmatmul.mubr.msk.f32.vlgmr.msra.gmra.mrb[0].mxu1 %vm474_vm6, %v473_v62 }
 0x214   :  { %v548_v1 = vpop.f32.mrb[0].mxu1 }
 0x215   :  { %v553_v63 = vrot.slane %v548_v1, 2  ;;  %v615_v31 = vpop.f32.mrb[1].mxu1 }
 0x217   :  { %v555_v32 = vadd.f32 %v553_v63, %v548_v1 }
 0x219   :  { %v580_v37 = vmul.f32 -1.442695, %v555_v32 }
 0x21b   :  { %633 = vpow2.f32 %v580_v37 }
 0x225   :  { %v634_v35 = vpop.eup %633 }
 0x226   :  { %v559_v16 = vadd.f32 1.0, %v634_v35 }
 0x228   :  { %635 = vrcp.f32 %v559_v16 }
 0x232   :  { %v636_v10 = vpop.eup %635 }
 0x233   :  { %562 = vst.msk [vmem:[#allocation4] sm:$0x3] %vm19_vm0, %v636_v10 }
 0x234   :  { %648 = shalt.err (!%p645_p4)
}
 0x235   :  { %s649_s21 = scalar_lea.hbm %s1386_s3, 32 }
 0x236   :  { %p650_p5 = scmp.ne.s32.totalorder %s1386_s3, %s649_s21  ;;  %p653_p6 = scmp.lt.u32.totalorder %s649_s21, %s1386_s3 }
 0x238   :  { %p655_p7 = pnand %p653_p6, %p650_p5 }
 0x23a   :  { %658 = shalt.err (!%p655_p7)
}
 0x23b   :  { %572 = dma.vmem_to_hbm [thread:$0]  %s570_s18, 32, %s1386_s3, [#allocation5]  }
 0x23c   :  { %659 = dma.done.wait [#allocation5], 32  }
 0x23d   :  { %660 = vsyncadd [#allocation5], 4294967264 }
 0x23e   :  { %576 = vsyncpa [#allocation5], 1 }

</bundles_post_ra>
